<compile_context>
chip_gen: v5e
topology: v5e:2x2
jax: 0.10.0
libtpu: 0.0.40
codegen_flags: <defaults>
</compile_context>

<pallas_src>
import functools
import math

import numpy as np

import jax
import jax.numpy as jnp
from jax.experimental import pallas as pl
from jax.experimental.pallas import tpu as pltpu


def _attn_kernel(*refs, n_head, batch, seq, use_identity_v, use_identity_proj):
    refs = list(refs)
    x_ref = refs.pop(0)          # (B*T, C) f32
    w_qkv_ref = refs.pop(0)      # (C, H*G)  per-head [q_h|k_h(|v_h)] columns, Q scale folded in
    b_qkv_ref = refs.pop(0)      # (1, H*G)
    bias_ref = refs.pop(0)       # (H*B*T, H*B*T) additive block-diagonal + causal mask
    w_proj_ref = b_proj_ref = None
    if not use_identity_proj:
        w_proj_ref = refs.pop(0)  # (C, C)  pre-transposed (in, out)
        b_proj_ref = refs.pop(0)  # (1, C)
    o_ref = refs.pop(0)          # (B*T, C)

    H, B, T = n_head, batch, seq
    BT = B * T

    x = x_ref[...]                               # f32, read once, no casts
    C = x.shape[-1]
    hd = C // H
    G = (2 if use_identity_v else 3) * hd        # per-head column group of the fused projection

    # ---- fused Q/K(/V) projection: one MXU matmul (32,32)@(32,H*G); the 1/sqrt(hd)
    # scale is already folded into the Q columns of weight and bias (prep time). ----
    qkv = jnp.dot(x, w_qkv_ref[...], preferred_element_type=jnp.float32) + b_qkv_ref[...]

    # ---- head split: one lane-slice + one sublane-concat per head (q and k share it).
    # Row order afterwards: r = (h*B + b)*T + t  -> T-row blocks per (head, batch). ----
    qkv_big = jnp.concatenate([qkv[:, h * G:(h + 1) * G] for h in range(H)], axis=0)  # (H*BT, G)
    q_big = qkv_big[:, :hd]                       # (H*BT, hd)  (pre-scaled)
    k_big = qkv_big[:, hd:2 * hd]                 # (H*BT, hd)
    if use_identity_v:
        # identity-V: v is just x, whose channels are already head-blocked
        v_big = jnp.concatenate([x[:, h * hd:(h + 1) * hd] for h in range(H)], axis=0)
    else:
        v_big = qkv_big[:, 2 * hd:3 * hd]

    # ---- one dense 128-lane score matmul over the folded (head, batch, query) axis ----
    s = jax.lax.dot_general(q_big, k_big,
                            dimension_numbers=(((1,), (1,)), ((), ())),
                            preferred_element_type=jnp.float32)        # (H*BT, H*BT)
    s = s + bias_ref[...]        # block-diagonal + causal additive mask (single f32 add)

    # stable softmax: every row keeps its in-block diagonal, so the row max is finite
    m = jnp.max(s, axis=-1, keepdims=True)
    p = jnp.exp(s - m)
    denom = jnp.sum(p, axis=-1, keepdims=True)

    # ---- dense PV matmul; normalize after the matmul ((H*BT, hd) divides, not (H*BT, H*BT)) ----
    y_big = jnp.dot(p, v_big, preferred_element_type=jnp.float32) / denom   # (H*BT, hd)

    # ---- merge heads back to channel-interleaved (B*T, C): one sublane-slice + concat per head ----
    y = jnp.concatenate([y_big[h * BT:(h + 1) * BT, :] for h in range(H)], axis=1)  # (BT, C)

    if use_identity_proj:
        # c_proj is IdentityProjection with zero bias: skip the matmul + bias add entirely
        o_ref[...] = y.astype(o_ref.dtype)
    else:
        out = jnp.dot(y, w_proj_ref[...], preferred_element_type=jnp.float32) + b_proj_ref[...]
        o_ref[...] = out.astype(o_ref.dtype)


def causal_self_attention(x, w_attn, b_attn, *, n_head,
                          use_identity_v=True, use_identity_output_projection=True,
                          w_proj=None, b_proj=None):
    """x: (B, T, C) float32.
    w_attn: (3C, C) c_attn weight in PyTorch nn.Linear layout; b_attn: (3C,).
    w_proj: (C, C), b_proj: (C,) -- only used when the output projection is real."""
    B, T, C = x.shape
    H = n_head
    assert C % H == 0
    hd = C // H
    BT, NT = B * T, H * B * T

    # ---------- prep-time weight massaging (layout + constant folding on weights) ----------
    scale = 1.0 / math.sqrt(hd)
    wq = w_attn[:C].T * scale                 # (C, C), fold 1/sqrt(hd) into Q columns
    wk = w_attn[C:2 * C].T
    bq = b_attn[:C] * scale
    bk = b_attn[C:2 * C]
    w_parts = [wq.reshape(C, H, 1, hd), wk.reshape(C, H, 1, hd)]
    b_parts = [bq.reshape(H, 1, hd), bk.reshape(H, 1, hd)]
    if not use_identity_v:
        w_parts.append(w_attn[2 * C:3 * C].T.reshape(C, H, 1, hd))
        b_parts.append(b_attn[2 * C:3 * C].reshape(H, 1, hd))
    # column order: for each head h -> [q_h | k_h (| v_h)]
    w_qkv = jnp.concatenate(w_parts, axis=2).reshape(C, -1)
    b_qkv = jnp.concatenate(b_parts, axis=1).reshape(1, -1)

    # precomputed additive attention bias: causal within each (head, batch) T-block,
    # -1e30 (finite, no inf-inf NaN risk) everywhere else (cross-block garbage scores).
    idx = np.arange(NT)
    allowed = ((idx[:, None] // T) == (idx[None, :] // T)) & \
              ((idx[:, None] % T) >= (idx[None, :] % T))
    attn_bias = jnp.asarray(np.where(allowed, 0.0, -1e30), dtype=jnp.float32)

    operands = [x.reshape(BT, C), w_qkv, b_qkv, attn_bias]
    if not use_identity_output_projection:
        operands += [w_proj.T, b_proj.reshape(1, C)]

    kernel = functools.partial(_attn_kernel, n_head=H, batch=B, seq=T,
                               use_identity_v=use_identity_v,
                               use_identity_proj=use_identity_output_projection)

    # Single invocation, no grid: the whole problem (~80 KiB) fits trivially in VMEM.
    out2d = pl.pallas_call(
        kernel,
        out_shape=jax.ShapeDtypeStruct((BT, C), x.dtype),
        in_specs=[pl.BlockSpec(memory_space=pltpu.MemorySpace.VMEM)] * len(operands),
        out_specs=pl.BlockSpec(memory_space=pltpu.MemorySpace.VMEM),
    )(*operands)
    return out2d.reshape(B, T, C)   # (B, T, C) reshape is wrapper-side plumbing


def _reference(x, w_attn, b_attn, n_head, use_identity_v, w_proj=None, b_proj=None):
    """float64 numpy reference mirroring the PyTorch forward (dropout=0, eval)."""
    x = np.asarray(x, np.float64)
    w = np.asarray(w_attn, np.float64)
    b = np.asarray(b_attn, np.float64)
    B, T, C = x.shape
    H = n_head
    hd = C // H
    qkv = x @ w.T + b
    q, k, v = np.split(qkv, 3, axis=-1)

    def heads(t):
        return t.reshape(B, T, H, hd).transpose(0, 2, 1, 3)

    q, k, v = heads(q), heads(k), heads(v)
    if use_identity_v:
        v = heads(x)
    att = (q @ k.transpose(0, 1, 3, 2)) / math.sqrt(hd)
    mask = np.tril(np.ones((T, T), dtype=bool))
    att = np.where(mask, att, -np.inf)
    att = np.exp(att - att.max(axis=-1, keepdims=True))
    att = att / att.sum(axis=-1, keepdims=True)
    y = (att @ v).transpose(0, 2, 1, 3).reshape(B, T, C)
    if w_proj is None:            # identity output projection with zero bias
        return y
    return y @ np.asarray(w_proj, np.float64).T + np.asarray(b_proj, np.float64)


if __name__ == "__main__":
    # documented synthetic config
    B, T, C, n_head = 2, 16, 32, 4
    use_identity_v = True
    use_identity_output_projection = True

    key = jax.random.PRNGKey(0)
    kx, kw, kb = jax.random.split(key, 3)

    x = jax.random.normal(kx, (B, T, C), dtype=jnp.float32)
    # c_attn: nn.Linear(C, 3C, bias=True) -> weight (3C, C), bias (3C,)
    w_attn = jax.random.normal(kw, (3 * C, C), dtype=jnp.float32) / math.sqrt(C)
    b_attn = 0.02 * jax.random.normal(kb, (3 * C,), dtype=jnp.float32)

    out = causal_self_attention(
        x, w_attn, b_attn,
        n_head=n_head,
        use_identity_v=use_identity_v,
        use_identity_output_projection=use_identity_output_projection)
    out = jax.block_until_ready(out)
    assert out.shape == (B, T, C)

    ref = _reference(x, w_attn, b_attn, n_head, use_identity_v)
    max_err = float(np.max(np.abs(np.asarray(out, np.float64) - ref)))
    # all-f32 in-kernel math (no bf16 casts, exact softmax) -> tight tolerance
    assert max_err < 1e-4, f"mismatch vs float64 reference (max abs err {max_err:.3e})"

    print("KERNEL_OK")
</pallas_src>

<mosaic_0001>
module attributes {stable_mosaic.version = 11 : i64} {
  func.func @_attn_kernel(%arg0: memref<32x32xf32, #tpu.memory_space<vmem>>, %arg1: memref<32x64xf32, #tpu.memory_space<vmem>>, %arg2: memref<1x64xf32, #tpu.memory_space<vmem>>, %arg3: memref<128x128xf32, #tpu.memory_space<vmem>>, %arg4: memref<32x32xf32, #tpu.memory_space<vmem>>) attributes {dimension_semantics = [], scalar_prefetch = 0 : i64, scratch_operands = 0 : i64, tpu.core_type = #tpu.core_type<tc>} {
    %c0 = arith.constant 0 : index
    %c0_0 = arith.constant 0 : index
    %0 = vector.load %arg0[%c0, %c0_0] : memref<32x32xf32, #tpu.memory_space<vmem>>, vector<32x32xf32>
    %c0_1 = arith.constant 0 : index
    %c0_2 = arith.constant 0 : index
    %1 = vector.load %arg1[%c0_1, %c0_2] : memref<32x64xf32, #tpu.memory_space<vmem>>, vector<32x64xf32>
    %cst = arith.constant dense<0.000000e+00> : vector<32x64xf32>
    %2 = tpu.matmul %0, %1, %cst {dimension_numbers = #tpu.dot_dimension_numbers<[1], [0], [0], [1], [0, 0, 1, 1], [], []>} : vector<32x32xf32>, vector<32x64xf32>, vector<32x64xf32> -> vector<32x64xf32>
    %c0_3 = arith.constant 0 : index
    %c0_4 = arith.constant 0 : index
    %3 = vector.load %arg2[%c0_3, %c0_4] : memref<1x64xf32, #tpu.memory_space<vmem>>, vector<1x64xf32>
    %4 = vector.broadcast %3 : vector<1x64xf32> to vector<32x64xf32>
    %5 = arith.addf %2, %4 : vector<32x64xf32>
    %6 = vector.extract_strided_slice %5 {offsets = [0, 0], sizes = [32, 16], strides = [1, 1]} : vector<32x64xf32> to vector<32x16xf32>
    %7 = vector.extract_strided_slice %5 {offsets = [0, 16], sizes = [32, 16], strides = [1, 1]} : vector<32x64xf32> to vector<32x16xf32>
    %8 = vector.extract_strided_slice %5 {offsets = [0, 32], sizes = [32, 16], strides = [1, 1]} : vector<32x64xf32> to vector<32x16xf32>
    %9 = vector.extract_strided_slice %5 {offsets = [0, 48], sizes = [32, 16], strides = [1, 1]} : vector<32x64xf32> to vector<32x16xf32>
    %10 = tpu.concatenate %6, %7, %8, %9 in 0 : vector<32x16xf32>, vector<32x16xf32>, vector<32x16xf32>, vector<32x16xf32> -> vector<128x16xf32>
    %11 = vector.extract_strided_slice %10 {offsets = [0, 0], sizes = [128, 8], strides = [1, 1]} : vector<128x16xf32> to vector<128x8xf32>
    %12 = vector.extract_strided_slice %10 {offsets = [0, 8], sizes = [128, 8], strides = [1, 1]} : vector<128x16xf32> to vector<128x8xf32>
    %13 = vector.extract_strided_slice %0 {offsets = [0, 0], sizes = [32, 8], strides = [1, 1]} : vector<32x32xf32> to vector<32x8xf32>
    %14 = vector.extract_strided_slice %0 {offsets = [0, 8], sizes = [32, 8], strides = [1, 1]} : vector<32x32xf32> to vector<32x8xf32>
    %15 = vector.extract_strided_slice %0 {offsets = [0, 16], sizes = [32, 8], strides = [1, 1]} : vector<32x32xf32> to vector<32x8xf32>
    %16 = vector.extract_strided_slice %0 {offsets = [0, 24], sizes = [32, 8], strides = [1, 1]} : vector<32x32xf32> to vector<32x8xf32>
    %17 = tpu.concatenate %13, %14, %15, %16 in 0 : vector<32x8xf32>, vector<32x8xf32>, vector<32x8xf32>, vector<32x8xf32> -> vector<128x8xf32>
    %cst_5 = arith.constant dense<0.000000e+00> : vector<128x128xf32>
    %18 = tpu.matmul %11, %12, %cst_5 {dimension_numbers = #tpu.dot_dimension_numbers<[1], [1], [0], [0], [0, 0, 1, 0], [], []>} : vector<128x8xf32>, vector<128x8xf32>, vector<128x128xf32> -> vector<128x128xf32>
    %c0_6 = arith.constant 0 : index
    %c0_7 = arith.constant 0 : index
    %19 = vector.load %arg3[%c0_6, %c0_7] : memref<128x128xf32, #tpu.memory_space<vmem>>, vector<128x128xf32>
    %20 = arith.addf %18, %19 : vector<128x128xf32>
    %cst_8 = arith.constant dense<0xFF800000> : vector<128xf32>
    %21 = vector.multi_reduction <maximumf>, %20, %cst_8 [1] : vector<128x128xf32> to vector<128xf32>
    %22 = vector.shape_cast %21 : vector<128xf32> to vector<128x1xf32>
    %23 = vector.broadcast %22 : vector<128x1xf32> to vector<128x128xf32>
    %24 = arith.subf %20, %23 : vector<128x128xf32>
    %25 = math.exp %24 : vector<128x128xf32>
    %cst_9 = arith.constant dense<0.000000e+00> : vector<128xf32>
    %26 = vector.multi_reduction <add>, %25, %cst_9 [1] : vector<128x128xf32> to vector<128xf32>
    %27 = vector.shape_cast %26 : vector<128xf32> to vector<128x1xf32>
    %cst_10 = arith.constant dense<0.000000e+00> : vector<128x8xf32>
    %28 = tpu.matmul %25, %17, %cst_10 {dimension_numbers = #tpu.dot_dimension_numbers<[1], [0], [0], [1], [0, 0, 1, 1], [], []>} : vector<128x128xf32>, vector<128x8xf32>, vector<128x8xf32> -> vector<128x8xf32>
    %29 = vector.broadcast %27 : vector<128x1xf32> to vector<128x8xf32>
    %30 = arith.divf %28, %29 : vector<128x8xf32>
    %31 = vector.extract_strided_slice %30 {offsets = [0, 0], sizes = [32, 8], strides = [1, 1]} : vector<128x8xf32> to vector<32x8xf32>
    %32 = vector.extract_strided_slice %30 {offsets = [32, 0], sizes = [32, 8], strides = [1, 1]} : vector<128x8xf32> to vector<32x8xf32>
    %33 = vector.extract_strided_slice %30 {offsets = [64, 0], sizes = [32, 8], strides = [1, 1]} : vector<128x8xf32> to vector<32x8xf32>
    %34 = vector.extract_strided_slice %30 {offsets = [96, 0], sizes = [32, 8], strides = [1, 1]} : vector<128x8xf32> to vector<32x8xf32>
    %35 = tpu.concatenate %31, %32, %33, %34 in 1 : vector<32x8xf32>, vector<32x8xf32>, vector<32x8xf32>, vector<32x8xf32> -> vector<32x32xf32>
    %c0_11 = arith.constant 0 : index
    %c0_12 = arith.constant 0 : index
    %36 = vector.load %arg4[%c0_11, %c0_12] : memref<32x32xf32, #tpu.memory_space<vmem>>, vector<32x32xf32>
    tpu.vector_store %arg4[%c0_11, %c0_12], %35 {strides = array<i32>} : memref<32x32xf32, #tpu.memory_space<vmem>>, vector<32x32xf32>,
    return
  }
}

</mosaic_0001>

<bundles_post_ra>
// kernel: tpu_custom_call.1
= control target key start
LH: loop header
LB: loop body
LE: loop exit
PB: predicated region body
PF: predicated region fallthrough
CT: control target
= control target key end

     0   :  { %9 = vsyncpa [#allocation3], 0  ;;  %s1792_s0 = inlined_call_operand.hbm [shape: f32[32,32], index: 0, kind: input, shape index: {}]   ;;  %s1793_s1 = inlined_call_operand.hbm [shape: f32[32,64], index: 1, kind: input, shape index: {}]   ;;  %s1794_s2 = inlined_call_operand.vmem [shape: f32[1,64], index: 2, kind: input, shape index: {}]   ;;  %s1795_s3 = inlined_call_operand.hbm [shape: f32[128,128], index: 3, kind: input, shape index: {}]   ;;  %s1796_s4 = inlined_call_operand.hbm [shape: f32[32,32], index: 4, kind: output, shape index: {}]  }
   0x1   :  { %10 = vsyncpa [#allocation6], 0 }
   0x2   :  { %11 = vsyncpa [#allocation4], 0  ;;  %s29_s17 = sshll.u32 %s1793_s1, 4  ;;  %s1142_s18 = smov [#allocation5]   ;;  %s30_s17 = int_to_ptr.hbm [resolvable:$true] %s29_s17 }
   0x3   :  { %s31_s19 = sshll.u32 %s1142_s18, 4  ;;  %s16_s22 = sshll.u32 %s1792_s0, 4  ;;  %s32_s19 = int_to_ptr.vmem [resolvable:$true] %s31_s19  ;;  %s17_s22 = int_to_ptr.hbm [resolvable:$true] %s16_s22 }
   0x4   :  { %s1143_s23 = smov 128   ;;  %s1144_s24 = smov 8  }
   0x5   :  { %37 = dma.hbm_to_vmem [thread:$0]  %s30_s17, 512, %s32_s19, [#allocation6], %s1143_s23, %s1143_s23, %s1144_s24  }
   0x6   :  { %s1145_s25 = smov [#allocation2]   ;;  %s44_s1 = sshll.u32 %s1795_s3, 4  ;;  %s45_s1 = int_to_ptr.hbm [resolvable:$true] %s44_s1 }
   0x7   :  { %s18_s26 = sshll.u32 %s1145_s25, 4  ;;  %s1146_s0 = smov [#allocation7]   ;;  %s19_s26 = int_to_ptr.vmem [resolvable:$true] %s18_s26 }
   0x8   :  { %24 = dma.hbm_to_vmem [thread:$0]  %s17_s22, 512, %s19_s26, [#allocation3], %s1143_s23, %s1143_s23, %s1144_s24  }
   0x9   :  { %s46_s29 = sshll.u32 %s1146_s0, 4  ;;  %s47_s29 = int_to_ptr.vmem [resolvable:$true] %s46_s29 }
   0xa   :  { %52 = dma.hbm_to_vmem [thread:$0]  %s45_s1, 2048, %s47_s29, [#allocation6], %s1143_s23, %s1143_s23, %s1144_s24  }
   0xb   :  { %1136 = dma.done.wait [#allocation3], 512  }
   0xc   :  { %1137 = vsyncadd [#allocation3], 4294966784 }
   0xd   :  { %1138 = dma.done.wait [#allocation6], 2560  }
   0xe   :  { %1139 = vsyncadd [#allocation6], 4294964736  ;;  %v72_v0 = vld [vmem:[#allocation5 + $0x18] sm:$0xff]  ;;  %v71_v1 = vld [vmem:[#allocation5 + $0x10] sm:$0xff]  ;;  %vm77_vm0 = vcmask 261120   ;;  %s1147_s5 = smov 80  }
   0xf   :  { %102 = vmatpush.msra.mxu0 %v72_v0  ;;  %v70_v2 = vld [vmem:[#allocation5 + $0x8] sm:$0xff]  ;;  %v69_v3 = vld [vmem:[#allocation5] sm:$0xff]  ;;  %v1206_v6 = vld [vmem:[#allocation2 + $0x10] sm:$0xff]  ;;  %s1148_s6 = smov 96   ;;  %s1150_s7 = smov 120   ;;  %vm231_vm1 = vcmask 64512  }
  0x10   :  { %v1198_v4 = vld [vmem:[#allocation2] sm:$0xff]  ;;  %v1202_v5 = vld [vmem:[#allocation2 + $0x8] sm:$0xff]  ;;  %v1210_v7 = vld [vmem:[#allocation2 + $0x18] sm:$0xff]  ;;  %s1151_s8 = smov 104   ;;  %s1152_s9 = smov 16  }
  0x11   :  { %103 = vmatpush.msra.mxu0 %v71_v1  ;;  %v975_v9 = vld [vmem:[%s1794_s2] ss:$0 sm:$0xff]  ;;  %s1149_s2 = smov 112   ;;  %v945_v45 = vpack.i.bf16 %v1206_v6, %v1210_v7  ;;  %v950_v46 = vpack.i.bf16 %v1198_v4, %v1202_v5  ;;  %v190_v48 = vld [vmem:[#allocation7 + $0x38] sm:$0xff]  ;;  %v188_v61 = vld [vmem:[#allocation7 + $0x28] sm:$0xff]  ;;  %s1153_s10 = smov 24  }
  0x12   :  { %v183_v52 = vld [vmem:[#allocation7] sm:$0xff]  ;;  %v192_v0 = vld [vmem:[#allocation7 + $0x48] sm:$0xff]  ;;  %s1154_s11 = smov [#allocation8]   ;;  %s850_s15 = sshll.u32 %s1796_s4, 4  ;;  %s851_s15 = int_to_ptr.hbm [resolvable:$true] %s850_s15 }
  0x13   :  { %104 = vmatpush.msra.mxu0 %v70_v2  ;;  %v189_v2 = vld [vmem:[#allocation7 + $0x30] sm:$0xff]  ;;  %s848_s12 = sshll.u32 %s1154_s11, 4  ;;  %s849_s12 = int_to_ptr.vmem [resolvable:$true] %s848_s12 }
  0x15   :  { %105 = vmatpush.msra.mxu0 %v69_v3 }
  0x16   :  { %864 = vmatmul.msk.f32.vlgmr.msra.gmra.mxu0 %vm77_vm0, %v1198_v4 }
  0x1e   :  { %865 = vmatmul.msk.f32.gmra.mxu0 %vm77_vm0, %v1202_v5 }
  0x26   :  { %866 = vmatmul.msk.f32.gmra.mxu0 %vm77_vm0, %v1206_v6 }
  0x2e   :  { %867 = vmatmul.msk.f32.gmra.mxu0 %vm77_vm0, %v1210_v7 }
  0x93   :  { %v107_v8 = vpop.f32.mrf.mxu0 }
  0x94   :  { %v1220_v13 = vadd.f32 %v975_v9, %v107_v8 }
  0x9b   :  { %v110_v10 = vpop.f32.mrf.mxu0 }
  0x9c   :  { %v1217_v11 = vadd.f32 %v975_v9, %v110_v10 }
  0x9e   :  { %141 = vrot.lane.b32.xlu1 %v1217_v11, %s1147_s5 }
  0xa3   :  { %v113_v12 = vpop.f32.mrf.mxu0 }
  0xa4   :  { %v1228_v16 = vadd.f32 %v975_v9, %v113_v12 }
  0xa6   :  { %139 = vrot.lane.b32.xlu1 %v1220_v13, %s1147_s5 }
  0xab   :  { %v116_v14 = vpop.f32.mrf.mxu0 }
  0xac   :  { %v1223_v15 = vadd.f32 %v975_v9, %v116_v14  ;;  %v196_v14 = vld [vmem:[#allocation7 + $0x68] sm:$0xff] }
  0xae   :  { %137 = vrot.lane.b32.xlu2 %v1223_v15, %s1148_s6  ;;  %145 = vrot.lane.b32.xlu0 %v1223_v15, %s1147_s5 }
  0xaf   :  { %131 = vrot.lane.b32.xlu1 %v1220_v13, %s1148_s6 }
  0xb6   :  { %135 = vrot.lane.b32.xlu2 %v1228_v16, %s1148_s6  ;;  %143 = vrot.lane.b32.xlu0 %v1228_v16, %s1147_s5 }
  0xbe   :  { %129 = vrot.lane.b32.xlu2 %v1223_v15, %s1149_s2  ;;  %133 = vrot.lane.b32.xlu0 %v1217_v11, %s1148_s6 }
  0xc6   :  { %125 = vrot.lane.b32.xlu2 %v1217_v11, %s1149_s2  ;;  %127 = vrot.lane.b32.xlu0 %v1228_v16, %s1149_s2 }
 0x108   :  { %v1239_v17 = vpop.permute.xlu2 %137 }
 0x110   :  { %v1241_v18 = vpop.permute.xlu1 %141  ;;  %v1245_v19 = vpop.permute.xlu2 %135 }
 0x111   :  { %225 = vrot.lane.b32.xlu2 %v1241_v18, %s1150_s7 }
 0x118   :  { %v1249_v20 = vpop.permute.xlu2 %129  ;;  %v1263_v23 = vpop.permute.xlu1 %139 }
 0x119   :  { %219 = vrot.lane.b32.xlu2 %v1245_v19, %s1150_s7 }
 0x120   :  { %v1251_v21 = vpop.permute.xlu0 %145  ;;  %v1277_v26 = vpop.permute.xlu2 %125 }
 0x121   :  { %213 = vrot.lane.b32.xlu2 %v1249_v20, %s1150_s7  ;;  %229 = vrot.lane.b32.xlu1 %v1251_v21, %s1150_s7  ;;  %v1271_v25 = vpop.permute.xlu1 %131 }
 0x128   :  { %v1257_v22 = vpop.permute.xlu0 %143 }
 0x129   :  { %227 = vrot.lane.b32.xlu0 %v1257_v22, %s1150_s7  ;;  %123 = vrot.lane.b32.xlu1 %v1220_v13, %s1149_s2 }
 0x130   :  { %v1269_v24 = vpop.permute.xlu0 %133 }
 0x131   :  { %221 = vrot.lane.b32.xlu1 %v1239_v17, %s1150_s7  ;;  %223 = vrot.lane.b32.xlu0 %v1263_v23, %s1150_s7 }
 0x138   :  { %v1279_v27 = vpop.permute.xlu0 %127 }
 0x139   :  { %217 = vrot.lane.b32.xlu0 %v1269_v24, %s1150_s7  ;;  %215 = vrot.lane.b32.xlu1 %v1271_v25, %s1150_s7 }
 0x141   :  { %211 = vrot.lane.b32.xlu0 %v1279_v27, %s1150_s7  ;;  %209 = vrot.lane.b32.xlu1 %v1277_v26, %s1150_s7 }
 0x149   :  { %205 = vrot.lane.b32.xlu0 %v1223_v15, %s1150_s7  ;;  %203 = vrot.lane.b32.xlu1 %v1228_v16, %s1150_s7 }
 0x151   :  { %199 = vrot.lane.b32.xlu0 %v1220_v13, %s1150_s7  ;;  %946 = vrot.lane.b32.xlu1 %v945_v45, %s1151_s8 }
 0x159   :  { %956 = vrot.lane.b32.xlu0 %v945_v45, %s1149_s2  ;;  %961 = vrot.lane.b32.xlu1 %v950_v46, %s1149_s2 }
 0x161   :  { %971 = vrot.lane.b32.xlu1 %v950_v46, %s1150_s7 }
 0x16b   :  { %v226_v31 = vpop.permute.xlu2 %225 }
 0x173   :  { %v220_v34 = vpop.permute.xlu2 %219 }
 0x17b   :  { %v214_v37 = vpop.permute.xlu2 %213 }
 0x193   :  { %v230_v28 = vpop.permute.xlu1 %229 }
 0x194   :  { %868 = vmatpush.xpose.msk.msra.mxu1 %vm231_vm1, %v230_v28  ;;  %900 = vmatpush.xpose.msk.msra.mxu3 %vm231_vm1, %v230_v28  ;;  %v184_v28 = vld [vmem:[#allocation7 + $0x8] sm:$0xff] }
 0x19b   :  { %v228_v29 = vpop.permute.xlu0 %227  ;;  %v124_v30 = vpop.permute.xlu1 %123 }
 0x19c   :  { %869 = vmatpush.xpose.msk.msra.mxu1 %vm231_vm1, %v228_v29  ;;  %901 = vmatpush.xpose.msk.msra.mxu3 %vm231_vm1, %v228_v29  ;;  %v193_v29 = vld [vmem:[#allocation7 + $0x50] sm:$0xff] }
 0x19d   :  { %207 = vrot.lane.b32.xlu2 %v124_v30, %s1150_s7 }
 0x1a0   :  { %870 = vmatpush.xpose.msk.msra.mxu1 %vm231_vm1, %v226_v31  ;;  %902 = vmatpush.xpose.msk.msra.mxu3 %vm231_vm1, %v226_v31 }
 0x1a3   :  { %v224_v32 = vpop.permute.xlu0 %223  ;;  %v222_v33 = vpop.permute.xlu1 %221 }
 0x1a4   :  { %871 = vmatpush.xpose.msk.msra.mxu1 %vm231_vm1, %v224_v32  ;;  %903 = vmatpush.xpose.msk.msra.mxu3 %vm231_vm1, %v224_v32 }
 0x1a5   :  { %201 = vrot.lane.b32.xlu2 %v1217_v11, %s1150_s7 }
 0x1a8   :  { %872 = vmatpush.xpose.msk.msra.mxu1 %vm231_vm1, %v222_v33  ;;  %904 = vmatpush.xpose.msk.msra.mxu3 %vm231_vm1, %v222_v33 }
 0x1ab   :  { %v218_v35 = vpop.permute.xlu0 %217  ;;  %v216_v36 = vpop.permute.xlu1 %215 }
 0x1ac   :  { %873 = vmatpush.xpose.msk.msra.mxu1 %vm231_vm1, %v220_v34  ;;  %905 = vmatpush.xpose.msk.msra.mxu3 %vm231_vm1, %v220_v34 }
 0x1ad   :  { %951 = vrot.lane.b32.xlu2 %v950_v46, %s1151_s8 }
 0x1b0   :  { %874 = vmatpush.xpose.msk.msra.mxu1 %vm231_vm1, %v218_v35  ;;  %906 = vmatpush.xpose.msk.msra.mxu3 %vm231_vm1, %v218_v35 }
 0x1b3   :  { %v212_v38 = vpop.permute.xlu0 %211  ;;  %v210_v39 = vpop.permute.xlu1 %209 }
 0x1b4   :  { %875 = vmatpush.xpose.msk.msra.mxu1 %vm231_vm1, %v216_v36  ;;  %907 = vmatpush.xpose.msk.msra.mxu3 %vm231_vm1, %v216_v36 }
 0x1b5   :  { %966 = vrot.lane.b32.xlu2 %v945_v45, %s1150_s7 }
 0x1b8   :  { %876 = vmatpush.xpose.msk.msra.mxu1 %vm231_vm1, %v214_v37  ;;  %908 = vmatpush.xpose.msk.msra.mxu3 %vm231_vm1, %v214_v37 }
 0x1bb   :  { %v206_v41 = vpop.permute.xlu0 %205  ;;  %v204_v42 = vpop.permute.xlu1 %203 }
 0x1bc   :  { %877 = vmatpush.xpose.msk.msra.mxu1 %vm231_vm1, %v212_v38  ;;  %909 = vmatpush.xpose.msk.msra.mxu3 %vm231_vm1, %v212_v38  ;;  %v195_v38 = vld [vmem:[#allocation7 + $0x60] sm:$0xff] }
 0x1c0   :  { %878 = vmatpush.xpose.msk.msra.mxu1 %vm231_vm1, %v210_v39  ;;  %910 = vmatpush.xpose.msk.msra.mxu3 %vm231_vm1, %v210_v39  ;;  %v197_v39 = vld [vmem:[#allocation7 + $0x70] sm:$0xff] }
 0x1c3   :  { %v200_v44 = vpop.permute.xlu0 %199  ;;  %v947_v8 = vpop.permute.xlu1 %946 }
 0x1f7   :  { %v208_v40 = vpop.permute.xlu2 %207 }
 0x1f8   :  { %879 = vmatpush.xpose.msk.msra.mxu1 %vm231_vm1, %v208_v40  ;;  %911 = vmatpush.xpose.msk.msra.mxu3 %vm231_vm1, %v208_v40 }
 0x1fc   :  { %880 = vmatpush.xpose.msk.msra.mxu1 %vm231_vm1, %v206_v41  ;;  %912 = vmatpush.xpose.msk.msra.mxu3 %vm231_vm1, %v206_v41 }
 0x1ff   :  { %v202_v43 = vpop.permute.xlu2 %201 }
 0x200   :  { %881 = vmatpush.xpose.msk.msra.mxu1 %vm231_vm1, %v204_v42  ;;  %913 = vmatpush.xpose.msk.msra.mxu3 %vm231_vm1, %v204_v42 }
 0x204   :  { %882 = vmatpush.xpose.msk.msra.mxu1 %vm231_vm1, %v202_v43  ;;  %914 = vmatpush.xpose.msk.msra.mxu3 %vm231_vm1, %v202_v43  ;;  %v185_v43 = vld [vmem:[#allocation7 + $0x10] sm:$0xff] }
 0x207   :  { %v952_v12 = vpop.permute.xlu2 %951 }
 0x208   :  { %883 = vmatpush.xpose.msk.msra.mxu1 %vm231_vm1, %v200_v44  ;;  %915 = vmatpush.xpose.msk.msra.mxu3 %vm231_vm1, %v200_v44  ;;  %v187_v44 = vld [vmem:[#allocation7 + $0x20] sm:$0xff] }
 0x20b   :  { %884 = vmatmul.msk.f32.vlgmr.msra.gmra.mxu1 %vm231_vm1, %v1220_v13  ;;  %891 = vmatmul.msk.f32.vlgmr.msra.gmra.mxu3 %vm231_vm1, %v1249_v20  ;;  %v949_v13 = vunpack.i.h.bf16 %v947_v8  ;;  %v957_v20 = vpop.permute.xlu0 %956 }
 0x20f   :  { %v967_v35 = vpop.permute.xlu2 %966 }
 0x210   :  { %v968_v36 = vunpack.i.l.bf16 %v967_v35  ;;  %v969_v37 = vunpack.i.h.bf16 %v967_v35 }
 0x213   :  { %885 = vmatmul.msk.f32.gmra.mxu1 %vm231_vm1, %v1217_v11  ;;  %892 = vmatmul.msk.f32.gmra.mxu3 %vm231_vm1, %v1271_v25  ;;  %v948_v11 = vunpack.i.l.bf16 %v947_v8  ;;  %v962_v25 = vpop.permute.xlu1 %961 }
 0x214   :  { %v964_v32 = vunpack.i.h.bf16 %v962_v25 }
 0x215   :  { %473 = vmatpush.msrb.mxu0 %v948_v11  ;;  %916 = vmatpush.msra.mxu2 %v948_v11 }
 0x217   :  { %474 = vmatpush.msrb.mxu0 %v949_v13  ;;  %917 = vmatpush.msra.mxu2 %v949_v13 }
 0x21b   :  { %886 = vmatmul.msk.f32.gmra.mxu1 %vm231_vm1, %v1228_v16  ;;  %893 = vmatmul.msk.f32.gmra.mxu3 %vm231_vm1, %v1269_v24  ;;  %v191_v16 = vld [vmem:[#allocation7 + $0x40] sm:$0xff]  ;;  %v958_v24 = vunpack.i.l.bf16 %v957_v20 }
 0x223   :  { %887 = vmatmul.msk.f32.gmra.mxu1 %vm231_vm1, %v1223_v15  ;;  %894 = vmatmul.msk.f32.gmra.mxu3 %vm231_vm1, %v1245_v19  ;;  %v953_v15 = vunpack.i.l.bf16 %v952_v12 }
 0x225   :  { %475 = vmatpush.msrb.mxu0 %v953_v15  ;;  %918 = vmatpush.msra.mxu2 %v953_v15 }
 0x22b   :  { %888 = vmatmul.msk.f32.gmra.mxu1 %vm231_vm1, %v124_v30  ;;  %895 = vmatmul.msk.f32.gmra.mxu3 %vm231_vm1, %v1239_v17  ;;  %v194_v17 = vld [vmem:[#allocation7 + $0x58] sm:$0xff]  ;;  %v963_v30 = vunpack.i.l.bf16 %v962_v25 }
 0x233   :  { %889 = vmatmul.msk.f32.gmra.mxu1 %vm231_vm1, %v1277_v26  ;;  %896 = vmatmul.msk.f32.gmra.mxu3 %vm231_vm1, %v1263_v23  ;;  %v954_v23 = vunpack.i.h.bf16 %v952_v12  ;;  %v186_v26 = vld [vmem:[#allocation7 + $0x18] sm:$0xff] }
 0x235   :  { %476 = vmatpush.msrb.mxu0 %v954_v23  ;;  %919 = vmatpush.msra.mxu2 %v954_v23 }
 0x237   :  { %477 = vmatpush.msrb.mxu0 %v958_v24  ;;  %920 = vmatpush.msra.mxu2 %v958_v24 }
 0x23b   :  { %890 = vmatmul.msk.f32.gmra.mxu1 %vm231_vm1, %v1279_v27  ;;  %897 = vmatmul.msk.f32.gmra.mxu3 %vm231_vm1, %v1241_v18  ;;  %v959_v27 = vunpack.i.h.bf16 %v957_v20 }
 0x23d   :  { %478 = vmatpush.msrb.mxu0 %v959_v27  ;;  %921 = vmatpush.msra.mxu2 %v959_v27 }
 0x23f   :  { %479 = vmatpush.msrb.mxu0 %v963_v30  ;;  %922 = vmatpush.msra.mxu2 %v963_v30 }
 0x241   :  { %480 = vmatpush.msrb.mxu0 %v964_v32  ;;  %923 = vmatpush.msra.mxu2 %v964_v32 }
 0x243   :  { %898 = vmatmul.msk.f32.gmra.mxu3 %vm231_vm1, %v1257_v22  ;;  %481 = vmatpush.msrb.mxu0 %v968_v36 }
 0x244   :  { %924 = vmatpush.msra.mxu2 %v968_v36 }
 0x245   :  { %482 = vmatpush.msrb.mxu0 %v969_v37 }
 0x246   :  { %925 = vmatpush.msra.mxu2 %v969_v37 }
 0x24b   :  { %899 = vmatmul.msk.f32.gmra.mxu3 %vm231_vm1, %v1251_v21 }
 0x288   :  { %v313_v47 = vpop.f32.mrf.mxu1 }
 0x289   :  { %v1368_v54 = vadd.f32 %v313_v47, %v183_v52  ;;  %v198_v47 = vld [vmem:[#allocation7 + $0x78] sm:$0xff] }
 0x28e   :  { %v334_v49 = vpop.f32.mrf.mxu3 }
 0x28f   :  { %v1365_v50 = vadd.f32 %v334_v49, %v190_v48 }
 0x290   :  { %v316_v51 = vpop.f32.mrf.mxu1 }
 0x291   :  { %375 = vmax.xlane.f32.xlu1 %v1365_v50  ;;  %v1397_v33 = vadd.f32 %v316_v51, %v184_v28  ;;  %v972_v51 = vpop.permute.xlu1 %971 }
 0x292   :  { %v973_v52 = vunpack.i.l.bf16 %v972_v51 }
 0x294   :  { %483 = vmatpush.msrb.mxu0 %v973_v52  ;;  %926 = vmatpush.msra.mxu2 %v973_v52 }
 0x296   :  { %v337_v53 = vpop.f32.mrf.mxu3 }
 0x297   :  { %v1388_v21 = vadd.f32 %v337_v53, %v191_v16  ;;  %v974_v53 = vunpack.i.h.bf16 %v972_v51 }
 0x298   :  { %v1370_v55 = vpop.f32.mrf.mxu1 }
 0x299   :  { %361 = vmax.xlane.f32.xlu1 %v1368_v54  ;;  %v1412_v45 = vadd.f32 %v1370_v55, %v185_v43  ;;  %484 = vmatpush.msrb.mxu0 %v974_v53 }
 0x29a   :  { %927 = vmatpush.msra.mxu2 %v974_v53 }
 0x29b   :  { %485 = vmatpush.msrb.mxu0 %v1210_v7 }
 0x29c   :  { %928 = vmatpush.msra.mxu2 %v1210_v7 }
 0x29d   :  { %486 = vmatpush.msrb.mxu0 %v1206_v6 }
 0x29e   :  { %v340_v56 = vpop.f32.mrf.mxu3  ;;  %929 = vmatpush.msra.mxu2 %v1206_v6 }
 0x29f   :  { %v1380_v9 = vadd.f32 %v340_v56, %v192_v0  ;;  %487 = vmatpush.msrb.mxu0 %v1202_v5 }
 0x2a0   :  { %v322_v57 = vpop.f32.mrf.mxu1  ;;  %930 = vmatpush.msra.mxu2 %v1202_v5 }
 0x2a1   :  { %v1395_v31 = vadd.f32 %v322_v57, %v186_v26  ;;  %488 = vmatpush.msrb.mxu0 %v1198_v4 }
 0x2a2   :  { %931 = vmatpush.msra.mxu2 %v1198_v4 }
 0x2a6   :  { %v343_v58 = vpop.f32.mrf.mxu3 }
 0x2a7   :  { %v1399_v34 = vadd.f32 %v343_v58, %v193_v29 }
 0x2a8   :  { %v1373_v59 = vpop.f32.mrf.mxu1 }
 0x2a9   :  { %v1415_v46 = vadd.f32 %v1373_v59, %v187_v44 }
 0x2ae   :  { %v346_v60 = vpop.f32.mrf.mxu3 }
 0x2af   :  { %v1390_v22 = vadd.f32 %v346_v60, %v194_v17 }
 0x2b0   :  { %v328_v62 = vpop.f32.mrf.mxu1 }
 0x2b1   :  { %v1375_v63 = vadd.f32 %v328_v62, %v188_v61 }
 0x2b3   :  { %371 = vmax.xlane.f32.xlu0 %v1375_v63 }
 0x2b6   :  { %v1378_v1 = vpop.f32.mrf.mxu3 }
 0x2b7   :  { %v1405_v41 = vadd.f32 %v1378_v1, %v195_v38 }
 0x2b8   :  { %v331_v3 = vpop.f32.mrf.mxu1 }
 0x2b9   :  { %v1382_v10 = vadd.f32 %v331_v3, %v189_v2 }
 0x2bb   :  { %373 = vmax.xlane.f32.xlu2 %v1382_v10  ;;  %379 = vmax.xlane.f32.xlu0 %v1380_v9 }
 0x2be   :  { %v352_v18 = vpop.f32.mrf.mxu3 }
 0x2bf   :  { %v1386_v19 = vadd.f32 %v352_v18, %v196_v14 }
 0x2c1   :  { %387 = vmax.xlane.f32.xlu1 %v1386_v19 }
 0x2c3   :  { %377 = vmax.xlane.f32.xlu2 %v1388_v21  ;;  %383 = vmax.xlane.f32.xlu0 %v1390_v22 }
 0x2c6   :  { %v355_v40 = vpop.f32.mrf.mxu3 }
 0x2c7   :  { %v1407_v42 = vadd.f32 %v355_v40, %v197_v39 }
 0x2c9   :  { %367 = vmax.xlane.f32.xlu1 %v1395_v31 }
 0x2cb   :  { %381 = vmax.xlane.f32.xlu2 %v1399_v34  ;;  %363 = vmax.xlane.f32.xlu0 %v1397_v33 }
 0x2ce   :  { %v358_v48 = vpop.f32.mrf.mxu3 }
 0x2cf   :  { %v1419_v49 = vadd.f32 %v358_v48, %v198_v47 }
 0x2d3   :  { %385 = vmax.xlane.f32.xlu2 %v1405_v41  ;;  %389 = vmax.xlane.f32.xlu0 %v1407_v42 }
 0x2db   :  { %365 = vmax.xlane.f32.xlu2 %v1412_v45  ;;  %369 = vmax.xlane.f32.xlu0 %v1415_v46 }
 0x2e3   :  { %391 = vmax.xlane.f32.xlu2 %v1419_v49 }
 0x304   :  { %v376_v55 = vpop.xlane.xlu1 %375 }
 0x305   :  { %v400_v59 = vsub.f32 %v1365_v50, %v376_v55 }
 0x307   :  { %v423_v7 = vmul.f32 1.442695, %v400_v59 }
 0x30c   :  { %v362_v56 = vpop.xlane.xlu1 %361 }
 0x30d   :  { %v393_v57 = vsub.f32 %v1368_v54, %v362_v56 }
 0x30f   :  { %v409_v58 = vmul.f32 1.442695, %v393_v57 }
 0x311   :  { %976 = vpow2.f32 %v409_v58 }
 0x312   :  { %978 = vpow2.f32 %v423_v7 }
 0x317   :  { %v977_v60 = vpop.eup %976 }
 0x318   :  { %441 = vadd.xlane.f32.xlu1 %v977_v60  ;;  %489 = vmatmul.f32.vlgmr.msrb.gmra.mxu0 %v977_v60  ;;  %v979_v6 = vpop.eup %978 }
 0x320   :  { %455 = vadd.xlane.f32.xlu1 %v979_v6 }
 0x326   :  { %v372_v5 = vpop.xlane.xlu0 %371 }
 0x327   :  { %v398_v61 = vsub.f32 %v1375_v63, %v372_v5 }
 0x329   :  { %v419_v62 = vmul.f32 1.442695, %v398_v61 }
 0x32b   :  { %980 = vpow2.f32 %v419_v62 }
 0x32e   :  { %v374_v4 = vpop.xlane.xlu2 %373  ;;  %v380_v0 = vpop.xlane.xlu0 %379 }
 0x32f   :  { %v399_v54 = vsub.f32 %v1382_v10, %v374_v4  ;;  %v402_v23 = vsub.f32 %v1380_v9, %v380_v0 }
 0x331   :  { %v1434_v1 = vpop.eup %980  ;;  %v421_v50 = vmul.f32 1.442695, %v399_v54  ;;  %v427_v27 = vmul.f32 1.442695, %v402_v23 }
 0x332   :  { %504 = vmatmul.f32.vlgmr.msra.gmra.mxu2 %v1434_v1 }
 0x333   :  { %982 = vpow2.f32 %v421_v50 }
 0x334   :  { %v388_v2 = vpop.xlane.xlu1 %387 }
 0x336   :  { %v378_v3 = vpop.xlane.xlu2 %377  ;;  %v384_v8 = vpop.xlane.xlu0 %383 }
 0x337   :  { %v401_v63 = vsub.f32 %v1388_v21, %v378_v3  ;;  %v404_v30 = vsub.f32 %v1390_v22, %v384_v8  ;;  %v406_v22 = vsub.f32 %v1386_v19, %v388_v2 }
 0x339   :  { %v1437_v11 = vpop.eup %982  ;;  %v425_v15 = vmul.f32 1.442695, %v401_v63  ;;  %v435_v40 = vmul.f32 1.442695, %v406_v22 }
 0x33a   :  { %507 = vmatmul.f32.gmra.mxu2 %v1437_v11 }
 0x33c   :  { %v368_v12 = vpop.xlane.xlu1 %367 }
 0x33d   :  { %v396_v13 = vsub.f32 %v1395_v31, %v368_v12  ;;  %v431_v31 = vmul.f32 1.442695, %v404_v30 }
 0x33e   :  { %v382_v14 = vpop.xlane.xlu2 %381  ;;  %v364_v10 = vpop.xlane.xlu0 %363 }
 0x33f   :  { %v415_v16 = vmul.f32 1.442695, %v396_v13  ;;  %v394_v17 = vsub.f32 %v1397_v33, %v364_v10  ;;  %v403_v18 = vsub.f32 %v1399_v34, %v382_v14 }
 0x341   :  { %984 = vpow2.f32 %v415_v16  ;;  %v411_v20 = vmul.f32 1.442695, %v394_v17  ;;  %v429_v24 = vmul.f32 1.442695, %v403_v18 }
 0x342   :  { %510 = vmatmul.f32.gmra.mxu2 %v979_v6  ;;  %986 = vpow2.f32 %v425_v15 }
 0x343   :  { %988 = vpow2.f32 %v411_v20 }
 0x344   :  { %990 = vpow2.f32 %v429_v24 }
 0x345   :  { %992 = vpow2.f32 %v427_v27 }
 0x346   :  { %v386_v21 = vpop.xlane.xlu2 %385  ;;  %v390_v25 = vpop.xlane.xlu0 %389  ;;  %994 = vpow2.f32 %v431_v31 }
 0x347   :  { %v985_v26 = vpop.eup %984 }
 0x348   :  { %447 = vadd.xlane.f32.xlu1 %v985_v26  ;;  %v987_v28 = vpop.eup %986 }
 0x349   :  { %v989_v29 = vpop.eup %988 }
 0x34a   :  { %513 = vmatmul.f32.gmra.mxu2 %v987_v28  ;;  %443 = vadd.xlane.f32.xlu2 %v989_v29  ;;  %v991_v33 = vpop.eup %990 }
 0x34b   :  { %492 = vmatmul.f32.gmra.mxu0 %v989_v29  ;;  %v993_v36 = vpop.eup %992 }
 0x34c   :  { %v995_v39 = vpop.eup %994 }
 0x34e   :  { %v366_v32 = vpop.xlane.xlu2 %365  ;;  %v370_v9 = vpop.xlane.xlu0 %369 }
 0x34f   :  { %v395_v34 = vsub.f32 %v1412_v45, %v366_v32  ;;  %v397_v35 = vsub.f32 %v1415_v46, %v370_v9  ;;  %v405_v45 = vsub.f32 %v1405_v41, %v386_v21  ;;  %v407_v46 = vsub.f32 %v1407_v42, %v390_v25 }
 0x350   :  { %461 = vadd.xlane.f32.xlu1 %v991_v33 }
 0x351   :  { %v413_v37 = vmul.f32 1.442695, %v395_v34  ;;  %v417_v38 = vmul.f32 1.442695, %v397_v35  ;;  %v433_v47 = vmul.f32 1.442695, %v405_v45 }
 0x352   :  { %516 = vmatmul.f32.gmra.mxu2 %v993_v36  ;;  %457 = vadd.xlane.f32.xlu2 %v987_v28  ;;  %v437_v48 = vmul.f32 1.442695, %v407_v46 }
 0x353   :  { %996 = vpow2.f32 %v413_v37 }
 0x354   :  { %998 = vpow2.f32 %v417_v38 }
 0x355   :  { %1000 = vpow2.f32 %v435_v40 }
 0x356   :  { %1002 = vpow2.f32 %v433_v47  ;;  %v392_v19 = vpop.xlane.xlu2 %391 }
 0x357   :  { %1004 = vpow2.f32 %v437_v48  ;;  %v408_v53 = vsub.f32 %v1419_v49, %v392_v19 }
 0x359   :  { %v997_v43 = vpop.eup %996  ;;  %v439_v42 = vmul.f32 1.442695, %v408_v53 }
 0x35a   :  { %v999_v44 = vpop.eup %998  ;;  %445 = vadd.xlane.f32.xlu0 %v997_v43  ;;  %495 = vmatmul.f32.gmra.mxu0 %v997_v43 }
 0x35b   :  { %463 = vadd.xlane.f32.xlu2 %v995_v39  ;;  %449 = vadd.xlane.f32.xlu1 %v999_v44  ;;  %v1001_v51 = vpop.eup %1000  ;;  %1006 = vpow2.f32 %v439_v42 }
 0x35c   :  { %519 = vmatmul.f32.gmra.mxu2 %v991_v33  ;;  %v1003_v52 = vpop.eup %1002 }
 0x35d   :  { %v1005_v41 = vpop.eup %1004 }
 0x361   :  { %v1007_v55 = vpop.eup %1006 }
 0x362   :  { %459 = vadd.xlane.f32.xlu0 %v993_v36  ;;  %498 = vmatmul.f32.gmra.mxu0 %v985_v26 }
 0x363   :  { %451 = vadd.xlane.f32.xlu2 %v1434_v1  ;;  %467 = vadd.xlane.f32.xlu1 %v1001_v51 }
 0x364   :  { %522 = vmatmul.f32.gmra.mxu2 %v995_v39 }
 0x36a   :  { %465 = vadd.xlane.f32.xlu0 %v1003_v52  ;;  %501 = vmatmul.f32.gmra.mxu0 %v999_v44 }
 0x36b   :  { %469 = vadd.xlane.f32.xlu2 %v1005_v41 }
 0x36c   :  { %525 = vmatmul.f32.gmra.mxu2 %v1003_v52 }
 0x372   :  { %453 = vadd.xlane.f32.xlu0 %v1437_v11 }
 0x374   :  { %528 = vmatmul.f32.gmra.mxu2 %v1001_v51 }
 0x37a   :  { %471 = vadd.xlane.f32.xlu0 %v1007_v55 }
 0x37c   :  { %531 = vmatmul.f32.gmra.mxu2 %v1005_v41 }
 0x384   :  { %534 = vmatmul.f32.gmra.mxu2 %v1007_v55 }
 0x38b   :  { %v442_v56 = vpop.xlane.xlu1 %441 }
 0x38c   :  { %1008 = vrcp.f32 %v442_v56  ;;  %v549_v7 = vand.u32 2147483648, %v442_v56  ;;  %v547_v49 = vand.u32 2147483647, %v442_v56  ;;  %vm543_vm3 = vweird.f32 %v442_v56 }
 0x38e   :  { %v550_v5 = vor.u32 1.1754944e-38, %v549_v7  ;;  %vm548_vm5 = vcmp.eq.f32.partialorder %v547_v49, 8.507059e+37 }
 0x392   :  { %v1009_v57 = vpop.eup %1008 }
 0x393   :  { %v539_v58 = vmul.f32 %v1009_v57, %v442_v56  ;;  %vm544_vm2 = vweird.f32 %v1009_v57  ;;  %v1456_v54 = vpop.xlane.xlu1 %455 }
 0x394   :  { %vm545_vm4 = vmor %vm543_vm3, %vm544_vm2  ;;  %vm648_vm10 = vweird.f32 %v1456_v54  ;;  %v652_v7 = vand.u32 2147483647, %v1456_v54 }
 0x395   :  { %v540_v59 = vsub.f32 1.0, %v539_v58  ;;  %v490_v62 = vpop.f32.mrf.mxu0 }
 0x397   :  { %v541_v60 = vmul.f32 %v1009_v57, %v540_v59 }
 0x399   :  { %v542_v6 = vadd.f32 %v1009_v57, %v541_v60 }
 0x39b   :  { %v546_v61 = vsel %vm545_vm4, %v1009_v57, %v542_v6  ;;  %v654_v6 = vand.u32 2147483648, %v1456_v54 }
 0x39c   :  { %v551_v4 = vsel %vm548_vm5, %v550_v5, %v546_v61 }
 0x39d   :  { %v1454_v0 = vmul.f32 %v551_v4, %v490_v62 }
 0x3b5   :  { %v1458_v1 = vpop.f32.mrf.mxu2 }
 0x3bb   :  { %v1460_v50 = vpop.xlane.xlu1 %447 }
 0x3bc   :  { %v594_v41 = vand.u32 2147483648, %v1460_v50  ;;  %vm588_vm15 = vweird.f32 %v1460_v50  ;;  %v592_v58 = vand.u32 2147483647, %v1460_v50 }
 0x3bd   :  { %v1462_v2 = vpop.f32.mrf.mxu2  ;;  %v444_v3 = vpop.xlane.xlu2 %443 }
 0x3be   :  { %1010 = vrcp.f32 %v444_v3  ;;  %v564_v16 = vand.u32 2147483648, %v444_v3  ;;  %v562_v20 = vand.u32 2147483647, %v444_v3  ;;  %vm558_vm7 = vweird.f32 %v444_v3 }
 0x3bf   :  { %1012 = vrcp.f32 %v1456_v54 }
 0x3c0   :  { %1014 = vrcp.f32 %v1460_v50  ;;  %v565_v21 = vor.u32 1.1754944e-38, %v564_v16  ;;  %vm563_vm9 = vcmp.eq.f32.partialorder %v562_v20, 8.507059e+37 }
 0x3c3   :  { %v1468_v12 = vpop.xlane.xlu1 %461 }
 0x3c4   :  { %v1011_v8 = vpop.eup %1010 }
 0x3c5   :  { %v1466_v11 = vpop.f32.mrf.mxu2  ;;  %v554_v63 = vmul.f32 %v1011_v8, %v444_v3  ;;  %v1470_v13 = vpop.xlane.xlu2 %457  ;;  %vm559_vm6 = vweird.f32 %v1011_v8 }
 0x3c6   :  { %v1472_v14 = vpop.eup %1012  ;;  %1016 = vrcp.f32 %v1470_v13  ;;  %vm560_vm8 = vmor %vm558_vm7, %vm559_vm6  ;;  %vm593_vm6 = vcmp.eq.f32.partialorder %v592_v58, 8.507059e+37 }
 0x3c7   :  { %v555_v10 = vsub.f32 1.0, %v554_v63  ;;  %v1474_v15 = vpop.eup %1014  ;;  %v644_v17 = vmul.f32 %v1472_v14, %v1456_v54  ;;  %vm649_vm11 = vweird.f32 %v1472_v14  ;;  %v595_v63 = vor.u32 1.1754944e-38, %v594_v41 }
 0x3c8   :  { %v584_v23 = vmul.f32 %v1474_v15, %v1460_v50  ;;  %v493_v31 = vpop.f32.mrf.mxu0  ;;  %vm589_vm12 = vweird.f32 %v1474_v15  ;;  %vm1524_vm14 = vmor %vm648_vm10, %vm649_vm11  ;;  %vm663_vm10 = vweird.f32 %v1470_v13 }
 0x3c9   :  { %v556_v18 = vmul.f32 %v1011_v8, %v555_v10  ;;  %v645_v27 = vsub.f32 1.0, %v644_v17  ;;  %vm1534_vm3 = vmor %vm588_vm15, %vm589_vm12 }
 0x3ca   :  { %v585_v9 = vsub.f32 1.0, %v584_v23 }
 0x3cb   :  { %v557_v24 = vadd.f32 %v1011_v8, %v556_v18  ;;  %v646_v34 = vmul.f32 %v1472_v14, %v645_v27 }
 0x3cc   :  { %v1492_v35 = vpop.eup %1016  ;;  %v586_v37 = vmul.f32 %v1474_v15, %v585_v9 }
 0x3cd   :  { %v446_v25 = vpop.xlane.xlu0 %445  ;;  %v1481_v26 = vpop.f32.mrf.mxu2  ;;  %v561_v28 = vsel %vm560_vm8, %v1011_v8, %v557_v24  ;;  %v1502_v43 = vadd.f32 %v1472_v14, %v646_v34  ;;  %v659_v46 = vmul.f32 %v1492_v35, %v1470_v13  ;;  %vm664_vm12 = vweird.f32 %v1492_v35 }
 0x3ce   :  { %v1483_v29 = vpop.xlane.xlu2 %463  ;;  %1018 = vrcp.f32 %v446_v25  ;;  %v1485_v30 = vpop.xlane.xlu1 %449  ;;  %v566_v32 = vsel %vm563_vm9, %v565_v21, %v561_v28  ;;  %v579_v19 = vand.u32 2147483648, %v446_v25  ;;  %v587_v52 = vadd.f32 %v1474_v15, %v586_v37 }
 0x3cf   :  { %v1487_v33 = vmul.f32 %v566_v32, %v493_v31  ;;  %1020 = vrcp.f32 %v1485_v30  ;;  %v577_v55 = vand.u32 2147483647, %v446_v25  ;;  %v660_v59 = vsub.f32 1.0, %v659_v46 }
 0x3d0   :  { %1022 = vrcp.f32 %v1468_v12  ;;  %vm573_vm2 = vweird.f32 %v446_v25  ;;  %v580_v5 = vor.u32 1.1754944e-38, %v579_v19  ;;  %v591_v61 = vsel %vm1534_vm3, %v1474_v15, %v587_v52 }
 0x3d1   :  { %v651_v50 = vsel %vm1524_vm14, %v1472_v14, %v1502_v43  ;;  %vm578_vm5 = vcmp.eq.f32.partialorder %v577_v55, 8.507059e+37  ;;  %v661_v15 = vmul.f32 %v1492_v35, %v660_v59  ;;  %v596_v21 = vsel %vm593_vm6, %v595_v63, %v591_v61 }
 0x3d2   :  { %vm603_vm8 = vweird.f32 %v1485_v30  ;;  %v607_v9 = vand.u32 2147483647, %v1485_v30  ;;  %v609_v34 = vand.u32 2147483648, %v1485_v30 }
 0x3d3   :  { %v662_v52 = vadd.f32 %v1492_v35, %v661_v15 }
 0x3d4   :  { %v1019_v36 = vpop.eup %1018 }
 0x3d5   :  { %v569_v38 = vmul.f32 %v1019_v36, %v446_v25  ;;  %v1495_v22 = vpop.xlane.xlu0 %459  ;;  %v1497_v39 = vpop.f32.mrf.mxu2  ;;  %vm574_vm13 = vweird.f32 %v1019_v36 }
 0x3d6   :  { %v1499_v40 = vpop.eup %1020  ;;  %v1506_v44 = vpop.xlane.xlu2 %451  ;;  %vm575_vm4 = vmor %vm573_vm2, %vm574_vm13  ;;  %vm608_vm2 = vcmp.eq.f32.partialorder %v607_v9, 8.507059e+37 }
 0x3d7   :  { %v1508_v45 = vpop.eup %1022  ;;  %v570_v47 = vsub.f32 1.0, %v569_v38  ;;  %v599_v48 = vmul.f32 %v1499_v40, %v1485_v30  ;;  %1024 = vrcp.f32 %v1506_v44  ;;  %v496_v51 = vpop.f32.mrf.mxu0  ;;  %vm604_vm7 = vweird.f32 %v1499_v40 }
 0x3d8   :  { %v689_v56 = vmul.f32 %v1508_v45, %v1468_v12  ;;  %1026 = vrcp.f32 %v1483_v29  ;;  %v1550_v17 = vpop.xlane.xlu1 %467  ;;  %v622_v38 = vand.u32 2147483647, %v1506_v44  ;;  %vm1577_vm11 = vmor %vm603_vm8, %vm604_vm7  ;;  %vm618_vm13 = vweird.f32 %v1506_v44 }
 0x3d9   :  { %v600_v53 = vsub.f32 1.0, %v599_v48  ;;  %v571_v42 = vmul.f32 %v1019_v36, %v570_v47  ;;  %1028 = vrcp.f32 %v1495_v22  ;;  %v669_v47 = vand.u32 2147483648, %v1470_v13 }
 0x3da   :  { %v690_v10 = vsub.f32 1.0, %v689_v56  ;;  %1030 = vrcp.f32 %v1550_v17  ;;  %vm623_vm3 = vcmp.eq.f32.partialorder %v622_v38, 8.507059e+37  ;;  %vm694_vm6 = vweird.f32 %v1508_v45 }
 0x3db   :  { %v572_v60 = vadd.f32 %v1019_v36, %v571_v42  ;;  %v601_v62 = vmul.f32 %v1499_v40, %v600_v53  ;;  %v610_v42 = vor.u32 1.1754944e-38, %v609_v34  ;;  %v670_v15 = vor.u32 1.1754944e-38, %v669_v47 }
 0x3dc   :  { %v691_v41 = vmul.f32 %v1508_v45, %v690_v10  ;;  %v655_v10 = vor.u32 1.1754944e-38, %v654_v6  ;;  %vm693_vm8 = vweird.f32 %v1468_v12  ;;  %v714_v34 = vand.u32 2147483648, %v1483_v29 }
 0x3dd   :  { %v1025_v4 = vpop.eup %1024  ;;  %v576_v3 = vsel %vm575_vm4, %v1019_v36, %v572_v60  ;;  %v1547_v8 = vpop.xlane.xlu0 %465  ;;  %v602_v32 = vadd.f32 %v1499_v40, %v601_v62  ;;  %v624_v36 = vand.u32 2147483648, %v1506_v44  ;;  %vm1603_vm4 = vmor %vm663_vm10, %vm664_vm12  ;;  %vm708_vm10 = vweird.f32 %v1483_v29 }
 0x3de   :  { %v614_v16 = vmul.f32 %v1025_v4, %v1506_v44  ;;  %v581_v18 = vsel %vm578_vm5, %v580_v5, %v576_v3  ;;  %v1558_v25 = vpop.eup %1026  ;;  %v1560_v28 = vpop.xlane.xlu2 %469  ;;  %vm619_vm9 = vweird.f32 %v1025_v4  ;;  %v667_v44 = vand.u32 2147483647, %v1470_v13 }
 0x3df   :  { %v1554_v20 = vmul.f32 %v581_v18, %v496_v51  ;;  %v1556_v23 = vpop.f32.mrf.mxu2  ;;  %v499_v24 = vpop.f32.mrf.mxu0  ;;  %v704_v46 = vmul.f32 %v1558_v25, %v1483_v29  ;;  %1032 = vrcp.f32 %v1560_v28  ;;  %v606_v30 = vsel %vm1577_vm11, %v1499_v40, %v602_v32  ;;  %vm620_vm15 = vmor %vm618_vm13, %vm619_vm9 }
 0x3e0   :  { %v615_v27 = vsub.f32 1.0, %v614_v16  ;;  %v1562_v31 = vmul.f32 %v596_v21, %v499_v24  ;;  %v1586_v19 = vpop.eup %1028  ;;  %v625_v55 = vor.u32 1.1754944e-38, %v624_v36  ;;  %v611_v60 = vsel %vm608_vm2, %v610_v42, %v606_v30  ;;  %vm1638_vm9 = vmor %vm693_vm8, %vm694_vm6 }
 0x3e1   :  { %v705_v40 = vsub.f32 1.0, %v704_v46  ;;  %v1597_v5 = vpop.eup %1030  ;;  %v674_v62 = vmul.f32 %v1586_v19, %v1495_v22  ;;  %v666_v13 = vsel %vm1603_vm4, %v1492_v35, %v662_v52  ;;  %v697_v16 = vand.u32 2147483647, %v1468_v12 }
 0x3e2   :  { %v616_v37 = vmul.f32 %v1025_v4, %v615_v27  ;;  %v699_v18 = vand.u32 2147483648, %v1468_v12  ;;  %vm653_vm5 = vcmp.eq.f32.partialorder %v652_v7, 8.507059e+37  ;;  %v692_v24 = vadd.f32 %v1508_v45, %v691_v41 }
 0x3e3   :  { %vm668_vm7 = vcmp.eq.f32.partialorder %v667_v44, 8.507059e+37  ;;  %v706_v54 = vmul.f32 %v1558_v25, %v705_v40  ;;  %v675_v6 = vsub.f32 1.0, %v674_v62  ;;  %v734_v21 = vmul.f32 %v1597_v5, %v1550_v17 }
 0x3e4   :  { %v617_v51 = vadd.f32 %v1025_v4, %v616_v37  ;;  %v671_v7 = vsel %vm668_vm7, %v670_v15, %v666_v13  ;;  %vm1642_vm14 = vcmp.eq.f32.partialorder %v697_v16, 8.507059e+37  ;;  %v700_v12 = vor.u32 1.1754944e-38, %v699_v18 }
 0x3e5   :  { %v1590_v53 = vpop.xlane.xlu0 %453  ;;  %v1611_v63 = vpop.eup %1032  ;;  %v696_v9 = vsel %vm1638_vm9, %v1508_v45, %v692_v24  ;;  %v672_v36 = vmul.f32 %v671_v7, %v1481_v26  ;;  %v707_v38 = vadd.f32 %v1558_v25, %v706_v54  ;;  %vm709_vm11 = vweird.f32 %v1558_v25 }
 0x3e6   :  { %1034 = vrcp.f32 %v1590_v53  ;;  %v621_v56 = vsel %vm620_vm15, %v1025_v4, %v617_v51  ;;  %v749_v27 = vmul.f32 %v1611_v63, %v1560_v28  ;;  %v735_v48 = vsub.f32 1.0, %v734_v21 }
 0x3e7   :  { %v1595_v58 = vpop.f32.mrf.mxu2  ;;  %v502_v59 = vpop.f32.mrf.mxu0  ;;  %v626_v49 = vsel %vm623_vm3, %v625_v55, %v621_v56  ;;  %1036 = vrcp.f32 %v1547_v8  ;;  %v676_v45 = vmul.f32 %v1586_v19, %v675_v6  ;;  %v639_v51 = vand.u32 2147483648, %v1590_v53  ;;  %vm1682_vm3 = vmor %vm708_vm10, %vm709_vm11 }
 0x3e8   :  { %v612_v4 = vmul.f32 %v611_v60, %v502_v59  ;;  %v627_v3 = vmul.f32 %v626_v49, %v1458_v1  ;;  %v656_v1 = vsel %vm653_vm5, %v655_v10, %v651_v50  ;;  %v750_v30 = vsub.f32 1.0, %v749_v27 }
 0x3e9   :  { %v657_v57 = vmul.f32 %v656_v1, %v1466_v11  ;;  %v712_v11 = vand.u32 2147483647, %v1483_v29  ;;  %v637_v26 = vand.u32 2147483647, %v1590_v53  ;;  %vm678_vm13 = vweird.f32 %v1495_v22 }
 0x3ea   :  { %784 = vrot.lane.b32.xlu0 %v627_v3, %s1144_s24  ;;  %782 = vrot.lane.b32.xlu2 %v612_v4, %s1144_s24  ;;  %v715_v55 = vor.u32 1.1754944e-38, %v714_v34  ;;  %vm679_vm2 = vweird.f32 %v1586_v19  ;;  %v701_v56 = vsel %vm1642_vm14, %v700_v12, %v696_v9  ;;  %vm633_vm4 = vweird.f32 %v1590_v53 }
 0x3eb   :  { %vm1668_vm15 = vcmp.eq.f32.partialorder %v712_v11, 8.507059e+37  ;;  %v711_v59 = vsel %vm1682_vm3, %v1558_v25, %v707_v38  ;;  %v736_v60 = vmul.f32 %v1597_v5, %v735_v48  ;;  %v640_v49 = vor.u32 1.1754944e-38, %v639_v51  ;;  %vm1708_vm9 = vmor %vm678_vm13, %vm679_vm2 }
 0x3ec   :  { %v1035_v35 = vpop.eup %1034  ;;  %v751_v61 = vmul.f32 %v1611_v63, %v750_v30  ;;  %v677_v29 = vadd.f32 %v1586_v19, %v676_v45  ;;  %vm638_vm6 = vcmp.eq.f32.partialorder %v637_v26, 8.507059e+37  ;;  %v682_v3 = vand.u32 2147483647, %v1495_v22 }
 0x3ed   :  { %v629_v43 = vmul.f32 %v1035_v35, %v1590_v53  ;;  %v1647_v50 = vpop.eup %1036  ;;  %v1658_v46 = vpop.xlane.xlu0 %471  ;;  %vm634_vm12 = vweird.f32 %v1035_v35  ;;  %v684_v53 = vand.u32 2147483648, %v1495_v22  ;;  %v702_v10 = vmul.f32 %v701_v56, %v1556_v23 }
 0x3ee   :  { %v719_v52 = vmul.f32 %v1647_v50, %v1547_v8  ;;  %1038 = vrcp.f32 %v1658_v46  ;;  %vm635_vm5 = vmor %vm633_vm4, %vm634_vm12  ;;  %v716_v25 = vsel %vm1668_vm15, %v715_v55, %v711_v59  ;;  %vm738_vm7 = vweird.f32 %v1550_v17 }
 0x3ef   :  { %v630_v37 = vsub.f32 1.0, %v629_v43  ;;  %v1660_v47 = vpop.f32.mrf.mxu2  ;;  %vm739_vm8 = vweird.f32 %v1597_v5  ;;  %v717_v23 = vmul.f32 %v716_v25, %v1595_v58  ;;  %v737_v1 = vadd.f32 %v1597_v5, %v736_v60 }
 0x3f0   :  { %v720_v62 = vsub.f32 1.0, %v719_v52  ;;  %v752_v54 = vadd.f32 %v1611_v63, %v751_v61  ;;  %vm754_vm14 = vweird.f32 %v1611_v63  ;;  %v744_v22 = vand.u32 2147483648, %v1550_v17  ;;  %vm1725_vm10 = vmor %vm738_vm7, %vm739_vm8 }
 0x3f1   :  { %v631_v41 = vmul.f32 %v1035_v35, %v630_v37  ;;  %v759_v7 = vand.u32 2147483648, %v1560_v28  ;;  %v685_v6 = vor.u32 1.1754944e-38, %v684_v53  ;;  %v742_v21 = vand.u32 2147483647, %v1550_v17 }
 0x3f2   :  { %788 = vrot.lane.b32.xlu0 %v657_v57, %s1144_s24  ;;  %798 = vrot.lane.b32.xlu2 %v672_v36, %s1152_s9  ;;  %vm753_vm11 = vweird.f32 %v1560_v28  ;;  %vm683_vm12 = vcmp.eq.f32.partialorder %v682_v3, 8.507059e+37  ;;  %vm723_vm15 = vweird.f32 %v1547_v8  ;;  %v741_v17 = vsel %vm1725_vm10, %v1597_v5, %v737_v1 }
 0x3f3   :  { %v632_v44 = vadd.f32 %v1035_v35, %v631_v41  ;;  %vm1738_vm13 = vmor %vm753_vm11, %vm754_vm14  ;;  %vm724_vm2 = vweird.f32 %v1647_v50  ;;  %v745_v12 = vor.u32 1.1754944e-38, %v744_v22  ;;  %v760_v43 = vor.u32 1.1754944e-38, %v759_v7 }
 0x3f4   :  { %v1702_v15 = vpop.eup %1038  ;;  %v727_v9 = vand.u32 2147483647, %v1547_v8  ;;  %v729_v11 = vand.u32 2147483648, %v1547_v8  ;;  %vm743_vm3 = vcmp.eq.f32.partialorder %v742_v21, 8.507059e+37  ;;  %v774_v8 = vand.u32 2147483648, %v1658_v46 }
 0x3f5   :  { %v636_v4 = vsel %vm635_vm5, %v1035_v35, %v632_v44  ;;  %v721_v35 = vmul.f32 %v1647_v50, %v720_v62  ;;  %v764_v27 = vmul.f32 %v1702_v15, %v1658_v46  ;;  %v746_v5 = vsel %vm743_vm3, %v745_v12, %v741_v17  ;;  %vm725_vm5 = vmor %vm723_vm15, %vm724_vm2 }
 0x3f6   :  { %v641_v13 = vsel %vm638_vm6, %v640_v49, %v636_v4  ;;  %v730_v30 = vor.u32 1.1754944e-38, %v729_v11  ;;  %vm728_vm6 = vcmp.eq.f32.partialorder %v727_v9, 8.507059e+37  ;;  %vm769_vm7 = vweird.f32 %v1702_v15 }
 0x3f7   :  { %v529_v16 = vpop.f32.mrf.mxu2  ;;  %v642_v18 = vmul.f32 %v641_v13, %v1462_v2  ;;  %v681_v2 = vsel %vm1708_vm9, %v1586_v19, %v677_v29  ;;  %v757_v19 = vand.u32 2147483647, %v1560_v28  ;;  %v756_v28 = vsel %vm1738_vm13, %v1611_v63, %v752_v54 }
 0x3f8   :  { %v686_v32 = vsel %vm683_vm12, %v685_v6, %v681_v2  ;;  %v722_v14 = vadd.f32 %v1647_v50, %v721_v35  ;;  %v765_v36 = vsub.f32 1.0, %v764_v27  ;;  %v747_v63 = vmul.f32 %v746_v5, %v529_v16 }
 0x3f9   :  { %786 = vrot.lane.b32.xlu1 %v642_v18, %s1144_s24  ;;  %vm758_vm4 = vcmp.eq.f32.partialorder %v757_v19, 8.507059e+37  ;;  %v687_v34 = vmul.f32 %v686_v32, %v1497_v39  ;;  %vm768_vm8 = vweird.f32 %v1658_v46  ;;  %v775_v55 = vor.u32 1.1754944e-38, %v774_v8 }
 0x3fa   :  { %802 = vrot.lane.b32.xlu0 %v702_v10, %s1152_s9  ;;  %804 = vrot.lane.b32.xlu2 %v717_v23, %s1152_s9  ;;  %v761_v38 = vsel %vm758_vm4, %v760_v43, %v756_v28  ;;  %v726_v45 = vsel %vm725_vm5, %v1647_v50, %v722_v14  ;;  %v766_v39 = vmul.f32 %v1702_v15, %v765_v36  ;;  %v772_v50 = vand.u32 2147483647, %v1658_v46  ;;  %vm770_vm9 = vmor %vm768_vm8, %vm769_vm7 }
 0x3fb   :  { %v731_v51 = vsel %vm728_vm6, %v730_v30, %v726_v45  ;;  %vm835_vm10 = vcmask 195584   ;;  %vm830_vm11 = vcmask 130048  }
 0x3fc   :  { %v732_v52 = vmul.f32 %v731_v51, %v1660_v47  ;;  %v767_v41 = vadd.f32 %v1702_v15, %v766_v39  ;;  %vm773_vm14 = vcmp.eq.f32.partialorder %v772_v50, 8.507059e+37 }
 0x3fe   :  { %v771_v26 = vsel %vm770_vm9, %v1702_v15, %v767_v41 }
 0x3ff   :  { %v532_v37 = vpop.f32.mrf.mxu2  ;;  %v776_v56 = vsel %vm773_vm14, %v775_v55, %v771_v26 }
 0x400   :  { %v762_v48 = vmul.f32 %v761_v38, %v532_v37 }
 0x401   :  { %800 = vrot.lane.b32.xlu1 %v687_v34, %s1152_s9 }
 0x402   :  { %816 = vrot.lane.b32.xlu0 %v747_v63, %s1153_s10  ;;  %818 = vrot.lane.b32.xlu2 %v762_v48, %s1153_s10 }
 0x407   :  { %v535_v42 = vpop.f32.mrf.mxu2 }
 0x408   :  { %v777_v40 = vmul.f32 %v776_v56, %v535_v42 }
 0x409   :  { %814 = vrot.lane.b32.xlu1 %v732_v52, %s1153_s10 }
 0x411   :  { %820 = vrot.lane.b32.xlu1 %v777_v40, %s1153_s10 }
 0x444   :  { %v783_v47 = vpop.permute.xlu2 %782 }
 0x44c   :  { %v799_v44 = vpop.permute.xlu2 %798 }
 0x454   :  { %v805_v60 = vpop.permute.xlu2 %804 }
 0x45c   :  { %v785_v59 = vpop.permute.xlu0 %784  ;;  %v819_v62 = vpop.permute.xlu2 %818 }
 0x45d   :  { %v827_v53 = vsel %vm231_vm1, %v1487_v33, %v785_v59 }
 0x464   :  { %v789_v49 = vpop.permute.xlu0 %788 }
 0x465   :  { %v829_v33 = vsel %vm231_vm1, %v1562_v31, %v789_v49 }
 0x466   :  { %v834_v1 = vsel %vm830_vm11, %v829_v33, %v805_v60 }
 0x46b   :  { %v787_v61 = vpop.permute.xlu1 %786 }
 0x46c   :  { %v828_v46 = vsel %vm231_vm1, %v1554_v20, %v787_v61  ;;  %v803_v29 = vpop.permute.xlu0 %802  ;;  %v826_v20 = vsel %vm231_vm1, %v1454_v0, %v783_v47 }
 0x46d   :  { %v833_v4 = vsel %vm830_vm11, %v828_v46, %v803_v29  ;;  %v831_v18 = vsel %vm830_vm11, %v826_v20, %v799_v44 }
 0x46e   :  { %v838_v3 = vsel %vm835_vm10, %v833_v4, %v819_v62 }
 0x46f   :  { %842 = vst.msk [vmem:[#allocation8 + $0x10] sm:$0xff] %vm77_vm0, %v838_v3 }
 0x473   :  { %v801_v10 = vpop.permute.xlu1 %800 }
 0x474   :  { %v832_v13 = vsel %vm830_vm11, %v827_v53, %v801_v10  ;;  %v817_v25 = vpop.permute.xlu0 %816 }
 0x475   :  { %v837_v16 = vsel %vm835_vm10, %v832_v13, %v817_v25 }
 0x476   :  { %841 = vst.msk [vmem:[#allocation8 + $0x8] sm:$0xff] %vm77_vm0, %v837_v16 }
 0x47b   :  { %v815_v15 = vpop.permute.xlu1 %814 }
 0x47c   :  { %v836_v24 = vsel %vm835_vm10, %v831_v18, %v815_v15 }
 0x47d   :  { %840 = vst.msk [vmem:[#allocation8] sm:$0xff] %vm77_vm0, %v836_v24 }
 0x483   :  { %v821_v23 = vpop.permute.xlu1 %820 }
 0x484   :  { %v839_v0 = vsel %vm835_vm10, %v834_v1, %v821_v23 }
 0x485   :  { %843 = vst.msk [vmem:[#allocation8 + $0x18] sm:$0xff] %vm77_vm0, %v839_v0 }
 0x486   :  { %856 = dma.vmem_to_hbm [thread:$0]  %s849_s12, 512, %s851_s15, [#allocation4], %s1143_s23, %s1143_s23, %s1144_s24  }
 0x487   :  { %1140 = dma.done.wait [#allocation4], 512  }
 0x488   :  { %1141 = vsyncadd [#allocation4], 4294966784 }
 0x489   :  { %861 = vsyncpa [#allocation3], 1 }
 0x48a   :  { %862 = vsyncpa [#allocation6], 1 }
 0x48b   :  { %863 = vsyncpa [#allocation4], 1 }

</bundles_post_ra>
